<compile_context>
chip_gen: v7x
topology: tpu7x:2x2x1
jax: 0.10.0
libtpu: 0.0.40
codegen_flags: <defaults>
</compile_context>

<pallas_src>
import functools

import jax
import jax.numpy as jnp
from jax.experimental import pallas as pl
from jax.experimental.pallas import tpu as pltpu

_EPS = 1e-5  # PyTorch nn.LayerNorm default eps


def _layernorm_kernel(x_ref, g_ref, o_ref, *, inv_dim, eps):
    # x_ref: (block_rows, dim), g_ref: (1, dim) = pre-folded (gamma + unit_offset)
    x = x_ref[...].astype(jnp.float32)
    # sum * (1/dim) instead of mean: replaces divides with multiplies; the
    # cross-lane reductions themselves go to the XLU slot.
    mean = jnp.sum(x, axis=-1, keepdims=True) * inv_dim
    centered = x - mean
    var = jnp.sum(centered * centered, axis=-1, keepdims=True) * inv_dim
    scale = jax.lax.rsqrt(var + eps)          # EUP slot (essentially free)
    gamma = g_ref[...].astype(jnp.float32)    # (1, dim) broadcast over rows
    o_ref[...] = (centered * scale * gamma).astype(o_ref.dtype)


def _choose_block_rows(rows, dim, itemsize):
    """Pick the row tile: large enough to amortize per-grid-step overhead,
    small enough that double-buffered in+out blocks (~4x block bytes) stay well
    inside the scoped VMEM budget on v5e/v6e/v7x, and leaving >=4 grid steps so
    the parallel row axis can feed both v7x TensorCores."""
    pack = {4: 8, 2: 16, 1: 32}.get(itemsize, 8)   # sublane packing of I/O dtype
    target_block_bytes = 4 << 20                   # ~4 MiB/block -> ~16 MiB live (2x in + 2x out)
    br = max(pack, (target_block_bytes // max(1, dim * itemsize)) // pack * pack)
    br = min(br, 1024)
    # keep the grid from collapsing to 1-2 steps when rows are plentiful
    if rows >= 4 * pack:
        br = min(br, max(pack, (rows // 4) // pack * pack))
    # never larger than the pack-rounded row count
    br = min(br, max(pack, pl.cdiv(rows, pack) * pack))
    return br


def layernorm_pallas(x, gamma, unit_offset=False, *, block_rows=None):
    """Pallas LayerNorm over the last dim (no bias), scaled by (gamma + unit_offset)."""
    dim = x.shape[-1]
    assert gamma.shape == (dim,)

    # Fold `self.gamma + float(self.unit_offset)` once, outside the kernel.
    gamma_eff = (gamma.astype(jnp.float32) + jnp.float32(float(unit_offset))).reshape(1, dim)

    orig_shape = x.shape
    x2d = x.reshape(-1, dim)
    rows = x2d.shape[0]
    itemsize = x2d.dtype.itemsize

    if block_rows is None:
        block_rows = _choose_block_rows(rows, dim, itemsize)

    # Ragged rows: no jnp.pad / slice round-trip. The last (partial) block reads
    # undefined tail rows, computes on them, and their writes are dropped --
    # rows are independent, so valid rows are unaffected.
    grid = (pl.cdiv(rows, block_rows),)

    kernel = functools.partial(_layernorm_kernel, inv_dim=1.0 / dim, eps=_EPS)

    cost = pl.CostEstimate(
        flops=7 * rows * dim,
        transcendentals=rows,
        bytes_accessed=2 * rows * dim * itemsize + dim * 4,
    )

    out = pl.pallas_call(
        kernel,
        out_shape=jax.ShapeDtypeStruct((rows, dim), x.dtype),
        grid_spec=pltpu.PrefetchScalarGridSpec(
            num_scalar_prefetch=0,
            grid=grid,
            in_specs=[
                pl.BlockSpec((block_rows, dim), lambda i: (i, 0)),
                pl.BlockSpec((1, dim), lambda i: (0, 0)),
            ],
            out_specs=pl.BlockSpec((block_rows, dim), lambda i: (i, 0)),
        ),
        compiler_params=pltpu.CompilerParams(
            dimension_semantics=("parallel",),
            # above v5e's 16 MiB scoped default; comfortably below v7x's 64 MiB physical
            vmem_limit_bytes=48 * 1024 * 1024,
        ),
        cost_estimate=cost,
    )(x2d, gamma_eff)

    return out.reshape(orig_shape)


class LayerNormPallas:
    """Mirror of the PyTorch LayerNorm module (elementwise_affine=False ln, external gamma)."""

    def __init__(self, dim, unit_offset=False):
        self.dim = dim
        self.unit_offset = unit_offset
        # nn.init.constant_(self.gamma, 1.0 - float(unit_offset))
        self.gamma = jnp.full((dim,), 1.0 - float(unit_offset), dtype=jnp.float32)

    def __call__(self, x):
        return layernorm_pallas(x, self.gamma, self.unit_offset)


def _reference(x, gamma, unit_offset):
    xf = x.astype(jnp.float32)
    mean = jnp.mean(xf, axis=-1, keepdims=True)
    var = jnp.mean((xf - mean) ** 2, axis=-1, keepdims=True)
    normed = (xf - mean) / jnp.sqrt(var + _EPS)
    return (normed * (gamma + float(unit_offset))).astype(x.dtype)


if __name__ == "__main__":
    key = jax.random.PRNGKey(0)
    k1, k2 = jax.random.split(key)

    # Case 1: small module-consistent shapes (dim=32 -> masked-store fallback path)
    batch, seq, hidden = 2, 8, 32
    x = jax.random.normal(k1, (batch, seq, hidden), dtype=jnp.float32)

    module = LayerNormPallas(hidden, unit_offset=False)
    out = jax.block_until_ready(module(x))
    ref = _reference(x, module.gamma, module.unit_offset)
    assert out.shape == x.shape
    assert jnp.allclose(out, ref, atol=1e-5, rtol=1e-5), "mismatch vs reference"

    # unit_offset=True path
    module_u = LayerNormPallas(hidden, unit_offset=True)
    out_u = jax.block_until_ready(module_u(x))
    ref_u = _reference(x, module_u.gamma, module_u.unit_offset)
    assert jnp.allclose(out_u, ref_u, atol=1e-5, rtol=1e-5), "mismatch vs reference (unit_offset)"

    # Case 2: lane-dense fast path (dim % 128 == 0), bf16 I/O, ragged rows
    # (rows=15 < block_rows=16 -> exercises the partial last block, no padding).
    batch2, seq2, hidden2 = 3, 5, 256
    x2 = jax.random.normal(k2, (batch2, seq2, hidden2), dtype=jnp.bfloat16)
    module2 = LayerNormPallas(hidden2, unit_offset=False)
    out2 = jax.block_until_ready(module2(x2))
    ref2 = _reference(x2, module2.gamma, module2.unit_offset)
    assert out2.shape == x2.shape
    assert jnp.allclose(out2.astype(jnp.float32), ref2.astype(jnp.float32),
                        atol=5e-2, rtol=5e-2), "mismatch vs reference (bf16 fast path)"

    print("KERNEL_OK")
</pallas_src>

<mosaic_0001>
module attributes {stable_mosaic.version = 11 : i64} {
  func.func @_layernorm_kernel(%arg0: i32, %arg1: memref<16x32xf32, #tpu.memory_space<vmem>>, %arg2: memref<1x32xf32, #tpu.memory_space<vmem>>, %arg3: memref<16x32xf32, #tpu.memory_space<vmem>>) attributes {dimension_semantics = [#tpu.dimension_semantics<parallel>], iteration_bounds = array<i64: 1>, scalar_prefetch = 0 : i64, scratch_operands = 0 : i64, tpu.core_type = #tpu.core_type<tc>, window_params = [{transform_indices = @transform_0, window_bounds = array<i64: 16, 32>}, {pipeline_mode = #tpu.pipeline_mode<synchronous>, transform_indices = @transform_1, window_bounds = array<i64: 1, 32>}, {transform_indices = @transform_2, window_bounds = array<i64: 16, 32>}]} {
    %c0 = arith.constant 0 : index
    %c0_0 = arith.constant 0 : index
    %0 = vector.load %arg1[%c0, %c0_0] : memref<16x32xf32, #tpu.memory_space<vmem>>, vector<16x32xf32>
    %cst = arith.constant dense<0.000000e+00> : vector<16xf32>
    %1 = vector.multi_reduction <add>, %0, %cst [1] : vector<16x32xf32> to vector<16xf32>
    %2 = vector.shape_cast %1 : vector<16xf32> to vector<16x1xf32>
    %cst_1 = arith.constant 3.125000e-02 : f32
    %3 = vector.broadcast %cst_1 : f32 to vector<16x1xf32>
    %4 = arith.mulf %2, %3 : vector<16x1xf32>
    %5 = vector.broadcast %4 : vector<16x1xf32> to vector<16x32xf32>
    %6 = arith.subf %0, %5 : vector<16x32xf32>
    %7 = arith.mulf %6, %6 : vector<16x32xf32>
    %cst_2 = arith.constant dense<0.000000e+00> : vector<16xf32>
    %8 = vector.multi_reduction <add>, %7, %cst_2 [1] : vector<16x32xf32> to vector<16xf32>
    %9 = vector.shape_cast %8 : vector<16xf32> to vector<16x1xf32>
    %cst_3 = arith.constant 3.125000e-02 : f32
    %10 = vector.broadcast %cst_3 : f32 to vector<16x1xf32>
    %11 = arith.mulf %9, %10 : vector<16x1xf32>
    %cst_4 = arith.constant 9.99999974E-6 : f32
    %12 = vector.broadcast %cst_4 : f32 to vector<16x1xf32>
    %13 = arith.addf %11, %12 : vector<16x1xf32>
    %14 = math.rsqrt %13 : vector<16x1xf32>
    %c0_5 = arith.constant 0 : index
    %c0_6 = arith.constant 0 : index
    %15 = vector.load %arg2[%c0_5, %c0_6] : memref<1x32xf32, #tpu.memory_space<vmem>>, vector<1x32xf32>
    %16 = vector.broadcast %14 : vector<16x1xf32> to vector<16x32xf32>
    %17 = arith.mulf %6, %16 : vector<16x32xf32>
    %18 = vector.broadcast %15 : vector<1x32xf32> to vector<16x32xf32>
    %19 = arith.mulf %17, %18 : vector<16x32xf32>
    %c0_7 = arith.constant 0 : index
    %c0_8 = arith.constant 0 : index
    %20 = vector.load %arg3[%c0_7, %c0_8] : memref<16x32xf32, #tpu.memory_space<vmem>>, vector<16x32xf32>
    tpu.vector_store %arg3[%c0_7, %c0_8], %19 {strides = array<i32>} : memref<16x32xf32, #tpu.memory_space<vmem>>, vector<16x32xf32>,
    return
  }
  func.func @transform_0(%arg0: i32) -> (i32, i32) {
    %c0_i32 = arith.constant 0 : i32
    %c0_i32_0 = arith.constant 0 : i32
    return %arg0, %c0_i32 : i32, i32
  }
  func.func @transform_1(%arg0: i32) -> (i32, i32) {
    %c0_i32 = arith.constant 0 : i32
    %c0_i32_0 = arith.constant 0 : i32
    %c0_i32_1 = arith.constant 0 : i32
    return %c0_i32, %c0_i32_0 : i32, i32
  }
  func.func @transform_2(%arg0: i32) -> (i32, i32) {
    %c0_i32 = arith.constant 0 : i32
    %c0_i32_0 = arith.constant 0 : i32
    return %arg0, %c0_i32 : i32, i32
  }
}

</mosaic_0001>

<bundles_post_ra>
// kernel: tpu_custom_call.1
= control target key start
LH: loop header
LB: loop body
LE: loop exit
PB: predicated region body
PF: predicated region fallthrough
CT: control target
= control target key end

     0   :  { %7 = vsyncpa [#allocation3], 0  ;;  %s198_s0 = inlined_call_operand.hbm [shape: f32[16,32], index: 0, kind: input, shape index: {}]   ;;  %s199_s1 = inlined_call_operand.vmem [shape: f32[1,32], index: 1, kind: input, shape index: {}]   ;;  %s200_s2 = inlined_call_operand.hbm [shape: f32[16,32], index: 2, kind: output, shape index: {}]  }
   0x1   :  { %8 = vsyncpa [#allocation4], 0  ;;  %s140_s9 = smov [#allocation2]   ;;  %s92_s13 = scalar_lea.hbm %s198_s0, 256 }
   0x2   :  { %s14_s10 = sshll.u32 %s140_s9, 4  ;;  %p93_p0 = scmp.ne.s32.totalorder %s198_s0, %s92_s13  ;;  %s15_s10 = int_to_ptr.vmem [resolvable:$true] %s14_s10 }
   0x3   :  { %p96_p1 = scmp.lt.u32.totalorder %s92_s13, %s198_s0 }
   0x5   :  { %p98_p2 = pnand %p96_p1, %p93_p0 }
   0x7   :  { %101 = shalt.err (!%p98_p2)
}
   0x8   :  { %s102_s18 = scalar_lea.vmem %s15_s10, 256  ;;  %p107_p4 = scmp.lt.s32.totalorder %s15_s10, %s15_s10 }
   0x9   :  { %p103_p3 = scmp.ne.s32.totalorder %s15_s10, %s102_s18  ;;  %p108_p5 = scmp.lt.s32.totalorder %s102_s18, %s102_s18 }
   0xb   :  { %p109_p6 = por %p108_p5, %p107_p4 }
   0xd   :  { %p110_p7 = pnand %p109_p6, %p103_p3 }
   0xf   :  { %113 = shalt.err (!%p110_p7)
}
  0x10   :  { %s141_s19 = smov 128   ;;  %s142_s20 = smov 8  }
  0x11   :  { %20 = dma.hbm_to_vmem [thread:$0]  %s198_s0, 256, %s15_s10, [#allocation3], %s141_s19, %s141_s19, %s142_s20  }
  0x12   :  { %136 = dma.done.wait [#allocation3], 256  }
  0x13   :  { %137 = vsyncadd [#allocation3], 4294967040  ;;  %vm28_vm0 = vcmask 261120   ;;  %v26_v0 = vld [vmem:[#allocation2] sm:$0xff]  ;;  %v27_v1 = vld [vmem:[#allocation2 + $0x8] sm:$0xff]  ;;  %s143_s24 = smov [#allocation5]  }
  0x14   :  { %v29_v2 = vsel %vm28_vm0, %v26_v0, 0.0  ;;  %v32_v3 = vsel %vm28_vm0, %v27_v1, 0.0  ;;  %v83_v21 = vld [vmem:[%s199_s1] ss:$0 sm:$0xff]  ;;  %s71_s25 = sshll.u32 %s143_s24, 4  ;;  %s72_s25 = int_to_ptr.vmem [resolvable:$true] %s71_s25 }
  0x15   :  { %30 = vadd.xlane.f32.xlu0 %v29_v2  ;;  %s114_s26 = scalar_lea.vmem %s72_s25, 256  ;;  %p119_p9 = scmp.lt.s32.totalorder %s72_s25, %s72_s25 }
  0x16   :  { %p115_p8 = scmp.ne.s32.totalorder %s72_s25, %s114_s26  ;;  %p120_p10 = scmp.lt.s32.totalorder %s114_s26, %s114_s26 }
  0x18   :  { %p121_p11 = por %p120_p10, %p119_p9 }
  0x19   :  { %33 = vadd.xlane.f32.xlu0 %v32_v3 }
  0x1a   :  { %p122_p12 = pnand %p121_p11, %p115_p8 }
  0xa2   :  { %v31_v4 = vpop.xlane.xlu0 %30 }
  0xa3   :  { %v35_v5 = vmul.f32 0.03125, %v31_v4 }
  0xa5   :  { %v37_v6 = vsub.f32 %v26_v0, %v35_v5 }
  0xa6   :  { %v34_v7 = vpop.xlane.xlu0 %33 }
  0xa7   :  { %v36_v8 = vmul.f32 0.03125, %v34_v7  ;;  %v39_v9 = vmul.f32 %v37_v6, %v37_v6 }
  0xa9   :  { %v38_v10 = vsub.f32 %v27_v1, %v36_v8  ;;  %v41_v11 = vsel %vm28_vm0, %v39_v9, 0.0 }
  0xaa   :  { %42 = vadd.xlane.f32.xlu1 %v41_v11 }
  0xab   :  { %v40_v12 = vmul.f32 %v38_v10, %v38_v10 }
  0xad   :  { %v44_v13 = vsel %vm28_vm0, %v40_v12, 0.0 }
  0xae   :  { %45 = vadd.xlane.f32.xlu1 %v44_v13 }
 0x137   :  { %v43_v14 = vpop.xlane.xlu1 %42 }
 0x138   :  { %v47_v15 = vmul.f32 0.03125, %v43_v14 }
 0x13a   :  { %v49_v16 = vadd.f32 1e-05, %v47_v15 }
 0x13b   :  { %v46_v17 = vpop.xlane.xlu1 %45 }
 0x13c   :  { %88 = vrsqrt.f32 %v49_v16  ;;  %v48_v18 = vmul.f32 0.03125, %v46_v17 }
 0x13e   :  { %v50_v19 = vadd.f32 1e-05, %v48_v18 }
 0x140   :  { %90 = vrsqrt.f32 %v50_v19 }
 0x146   :  { %v89_v20 = vpop.eup %88 }
 0x147   :  { %v54_v22 = vmul.f32 %v89_v20, %v37_v6 }
 0x149   :  { %v62_v23 = vmul.f32 %v83_v21, %v54_v22 }
 0x14a   :  { %v91_v24 = vpop.eup %90 }
 0x14b   :  { %v55_v25 = vmul.f32 %v91_v24, %v38_v10  ;;  %64 = vst.msk [vmem:[#allocation5] sm:$0xff] %vm28_vm0, %v62_v23 }
 0x14d   :  { %v63_v26 = vmul.f32 %v83_v21, %v55_v25 }
 0x14f   :  { %65 = vst.msk [vmem:[#allocation5 + $0x8] sm:$0xff] %vm28_vm0, %v63_v26 }
 0x150   :  { %125 = shalt.err (!%p122_p12)
}
 0x151   :  { %s126_s28 = scalar_lea.hbm %s200_s2, 256 }
 0x152   :  { %p127_p13 = scmp.ne.s32.totalorder %s200_s2, %s126_s28  ;;  %p130_p0 = scmp.lt.u32.totalorder %s126_s28, %s200_s2 }
 0x154   :  { %p132_p1 = pnand %p130_p0, %p127_p13 }
 0x156   :  { %135 = shalt.err (!%p132_p1)
}
 0x157   :  { %77 = dma.vmem_to_hbm [thread:$0]  %s72_s25, 256, %s200_s2, [#allocation4], %s141_s19, %s141_s19, %s142_s20  }
 0x158   :  { %138 = dma.done.wait [#allocation4], 256  }
 0x159   :  { %139 = vsyncadd [#allocation4], 4294967040 }
 0x15a   :  { %81 = vsyncpa [#allocation3], 1 }
 0x15b   :  { %82 = vsyncpa [#allocation4], 1 }

</bundles_post_ra>
